<compile_context>
chip_gen: v5e
topology: v5e:2x2
jax: 0.10.0
libtpu: 0.0.40
codegen_flags: <defaults>
</compile_context>

<pallas_src>
import jax
import jax.numpy as jnp
from jax.experimental import pallas as pl
from jax.experimental.pallas import tpu as pltpu

HEAD_WIDTH = 128   # fused actor|critic|zero-pad head width (lane-dense)
FC2_WIDTH = 128    # fc2 output padded 64 -> 128
FC3_WIDTH = 128    # fc3 output width (already 128)


def _round_up(n, m):
    return ((n + m - 1) // m) * m


# ----------------------------------------------------------------------------
# Kernel
# ----------------------------------------------------------------------------
def actor_critic_kernel(x_ref,
                        w1_ref, b1_ref,
                        w2_ref, b2_ref,
                        w3_ref, b3_ref,
                        wh_ref, bh_ref,
                        head_ref):
    mm = w1_ref.dtype  # matmul input dtype (f32 or bf16); accumulation is f32

    x = x_ref[...]

    # fc1 + ReLU (dropout = identity in eval mode); width is 128-aligned.
    h1 = jnp.dot(x, w1_ref[...], preferred_element_type=jnp.float32) + b1_ref[...]
    h1 = jnp.maximum(h1, 0.0)

    # fc2 + ReLU (dropout = identity in eval mode); output padded to 128.
    h2 = jnp.dot(h1.astype(mm), w2_ref[...],
                 preferred_element_type=jnp.float32) + b2_ref[...]
    h2 = jnp.maximum(h2, 0.0)

    # fc3 + ReLU; K = 128 after padding.
    h3 = jnp.dot(h2.astype(mm), w3_ref[...],
                 preferred_element_type=jnp.float32) + b3_ref[...]
    h3 = jnp.maximum(h3, 0.0)

    # fused actor|critic|zero-pad head -> single lane-dense (tb, 128) store.
    head_ref[...] = (jnp.dot(h3.astype(mm), wh_ref[...],
                             preferred_element_type=jnp.float32) + bh_ref[...])


# ----------------------------------------------------------------------------
# One-time parameter preparation (padding / head fusion / dtype cast)
# ----------------------------------------------------------------------------
def prepare_params(params, *, matmul_dtype=jnp.float32):
    """Pad + fuse weights once.  Zero padding keeps the math exact:
    padded fc1/fc2 lanes are bias-0 -> ReLU keeps them 0 -> padded K rows of
    the next weight are 0, so they contribute nothing."""
    w1, b1 = params["fc1"]
    w2, b2 = params["fc2"]
    w3, b3 = params["fc3"]
    wa, ba = params["actor"]
    wc, bc = params["critic"]
    out_size = wa.shape[1]
    assert out_size + 1 <= HEAD_WIDTH, "fused head assumes output_size + 1 <= 128"

    h1 = w1.shape[1]
    h1p = _round_up(h1, 128)

    # fc1: pad hidden width (e.g. 294 -> 384)
    w1p = jnp.pad(w1, ((0, 0), (0, h1p - h1))).astype(matmul_dtype)
    b1p = jnp.pad(b1, ((0, 0), (0, h1p - h1))).astype(jnp.float32)
    # fc2: pad K (294 -> 384) and N (64 -> 128)
    w2p = jnp.pad(w2, ((0, h1p - h1), (0, FC2_WIDTH - w2.shape[1]))).astype(matmul_dtype)
    b2p = jnp.pad(b2, ((0, 0), (0, FC2_WIDTH - b2.shape[1]))).astype(jnp.float32)
    # fc3: pad K (64 -> 128)
    w3p = jnp.pad(w3, ((0, FC2_WIDTH - w3.shape[0]), (0, 0))).astype(matmul_dtype)
    b3p = b3.astype(jnp.float32)
    # fused actor|critic head, padded to 128 lanes
    pad_h = HEAD_WIDTH - (out_size + 1)
    wh = jnp.pad(jnp.concatenate([wa, wc], axis=1), ((0, 0), (0, pad_h))).astype(matmul_dtype)
    bh = jnp.pad(jnp.concatenate([ba, bc], axis=1), ((0, 0), (0, pad_h))).astype(jnp.float32)

    return {
        "tensors": (w1p, b1p, w2p, b2p, w3p, b3p, wh, bh),
        "out_size": out_size,
        "in_features": w1.shape[0],
        "matmul_dtype": matmul_dtype,
    }


# ----------------------------------------------------------------------------
# Forward wrappers
# ----------------------------------------------------------------------------
def actor_critic_head(x, prep, *, batch_tile=1024, core_parallel=False):
    """Run the fused kernel; returns the padded (B, 128) head slab."""
    B, in_f = x.shape
    w1p, b1p, w2p, b2p, w3p, b3p, wh, bh = prep["tensors"]
    assert in_f == prep["in_features"]
    mm_dtype = prep["matmul_dtype"]

    # Batch tile: big tiles amortize the ~0.35us/step overhead; cap at 4096 so
    # the working set stays comfortably inside v7x's 64 MiB VMEM.
    tb = min(min(batch_tile, 4096), B)
    if core_parallel and B >= 2:
        # v7x megacore: ensure >= 2 grid steps so both TensorCores get work.
        tb = min(tb, max(8, _round_up(pl.cdiv(B, 2), 8)))
    grid = (pl.cdiv(B, tb),)

    # Raise the scoped-VMEM limit only when the tile is big enough to need it.
    vmem_limit = None
    if tb > 1024:
        itemsize = jnp.dtype(mm_dtype).itemsize
        act_bytes = tb * (2 * in_f * itemsize                     # x tile (x2 buf)
                          + (w1p.shape[1] + FC2_WIDTH + FC3_WIDTH) * 4  # h1/h2/h3
                          + 2 * HEAD_WIDTH * 4)                   # head tile (x2 buf)
        wt_bytes = 2 * sum(int(t.size) * t.dtype.itemsize for t in prep["tensors"])
        vmem_limit = int(min(act_bytes + wt_bytes + (4 << 20), 56 << 20))

    const = lambda arr: pl.BlockSpec(arr.shape, lambda i: (0, 0))  # VMEM-resident
    dim_sem = (pltpu.CORE_PARALLEL,) if core_parallel else ("parallel",)

    head = pl.pallas_call(
        actor_critic_kernel,
        out_shape=jax.ShapeDtypeStruct((B, HEAD_WIDTH), jnp.float32),
        grid=grid,
        in_specs=[
            pl.BlockSpec((tb, in_f), lambda i: (i, 0)),   # activations: tiled on B
            const(w1p), const(b1p),
            const(w2p), const(b2p),
            const(w3p), const(b3p),
            const(wh), const(bh),
        ],
        out_specs=pl.BlockSpec((tb, HEAD_WIDTH), lambda i: (i, 0)),
        compiler_params=pltpu.CompilerParams(
            dimension_semantics=dim_sem,
            vmem_limit_bytes=vmem_limit),
    )(x.astype(mm_dtype), w1p, b1p, w2p, b2p, w3p, b3p, wh, bh)
    return head


def actor_critic_forward(x, prep, **kwargs):
    """Returns (actor_out, critic_out). Call this inside jit so the narrow
    slices of the lane-dense head fuse with the consumer instead of
    materializing extra (B, out)/(B, 1) copies in HBM."""
    head = actor_critic_head(x, prep, **kwargs)
    out = prep["out_size"]
    return head[:, :out], head[:, out:out + 1]


# ----------------------------------------------------------------------------
# Parameter init + pure-JAX reference
# ----------------------------------------------------------------------------
def init_linear(key, in_f, out_f):
    """PyTorch-style uniform(-1/sqrt(in), 1/sqrt(in)) init.
    Weight stored as (in_f, out_f) — transpose of torch's (out_f, in_f)."""
    kw, kb = jax.random.split(key)
    bound = 1.0 / jnp.sqrt(jnp.float32(in_f))
    w = jax.random.uniform(kw, (in_f, out_f), jnp.float32, -bound, bound)
    b = jax.random.uniform(kb, (1, out_f), jnp.float32, -bound, bound)
    return w, b


def make_params(key, input_size, output_size, sizer=3):
    keys = jax.random.split(key, 5)
    h1 = 98 * sizer
    return {
        "fc1":    init_linear(keys[0], input_size, h1),
        "fc2":    init_linear(keys[1], h1, 64),
        "fc3":    init_linear(keys[2], 64, 128),
        "actor":  init_linear(keys[3], 128, output_size),
        "critic": init_linear(keys[4], 128, 1),
    }


def reference_forward(x, params):
    relu = lambda v: jnp.maximum(v, 0.0)
    h = relu(x @ params["fc1"][0] + params["fc1"][1])
    h = relu(h @ params["fc2"][0] + params["fc2"][1])
    h = relu(h @ params["fc3"][0] + params["fc3"][1])
    return (h @ params["actor"][0] + params["actor"][1],
            h @ params["critic"][0] + params["critic"][1])


if __name__ == "__main__":
    key = jax.random.PRNGKey(0)
    k_x, k_p = jax.random.split(key)

    batch = 8
    input_size = 16
    output_size = 4
    sizer = 3

    x = jax.random.normal(k_x, (batch, input_size), jnp.float32)
    params = make_params(k_p, input_size, output_size, sizer)
    a_ref, c_ref = reference_forward(x, params)

    # --- f32 matmul path: exact parity with the reference ---------------------
    prep_f32 = prepare_params(params, matmul_dtype=jnp.float32)
    fwd_f32 = jax.jit(lambda xx: actor_critic_forward(xx, prep_f32))
    actor_out, critic_out = fwd_f32(x)
    jax.block_until_ready((actor_out, critic_out))

    assert actor_out.shape == (batch, output_size)
    assert critic_out.shape == (batch, 1)
    assert jnp.allclose(actor_out, a_ref, atol=1e-4, rtol=1e-4)
    assert jnp.allclose(critic_out, c_ref, atol=1e-4, rtol=1e-4)

    # --- bf16 matmul path (v6e/v7x MXU perf option): looser tolerance ---------
    prep_bf16 = prepare_params(params, matmul_dtype=jnp.bfloat16)
    fwd_bf16 = jax.jit(lambda xx: actor_critic_forward(xx, prep_bf16))
    a_bf, c_bf = fwd_bf16(x)
    jax.block_until_ready((a_bf, c_bf))

    assert a_bf.shape == (batch, output_size)
    assert c_bf.shape == (batch, 1)
    assert jnp.allclose(a_bf, a_ref, atol=5e-2, rtol=5e-2)
    assert jnp.allclose(c_bf, c_ref, atol=5e-2, rtol=5e-2)

    print("KERNEL_OK")
</pallas_src>

<mosaic_0001>
module attributes {stable_mosaic.version = 11 : i64} {
  func.func @actor_critic_kernel(%arg0: i32, %arg1: memref<8x16xf32, #tpu.memory_space<vmem>>, %arg2: memref<16x384xf32, #tpu.memory_space<vmem>>, %arg3: memref<1x384xf32, #tpu.memory_space<vmem>>, %arg4: memref<384x128xf32, #tpu.memory_space<vmem>>, %arg5: memref<1x128xf32, #tpu.memory_space<vmem>>, %arg6: memref<128x128xf32, #tpu.memory_space<vmem>>, %arg7: memref<1x128xf32, #tpu.memory_space<vmem>>, %arg8: memref<128x128xf32, #tpu.memory_space<vmem>>, %arg9: memref<1x128xf32, #tpu.memory_space<vmem>>, %arg10: memref<8x128xf32, #tpu.memory_space<vmem>>) attributes {dimension_semantics = [#tpu.dimension_semantics<parallel>], iteration_bounds = array<i64: 1>, scalar_prefetch = 0 : i64, scratch_operands = 0 : i64, tpu.core_type = #tpu.core_type<tc>, window_params = [{transform_indices = @transform_0, window_bounds = array<i64: 8, 16>}, {pipeline_mode = #tpu.pipeline_mode<synchronous>, transform_indices = @transform_1, window_bounds = array<i64: 16, 384>}, {pipeline_mode = #tpu.pipeline_mode<synchronous>, transform_indices = @transform_2, window_bounds = array<i64: 1, 384>}, {pipeline_mode = #tpu.pipeline_mode<synchronous>, transform_indices = @transform_3, window_bounds = array<i64: 384, 128>}, {pipeline_mode = #tpu.pipeline_mode<synchronous>, transform_indices = @transform_4, window_bounds = array<i64: 1, 128>}, {pipeline_mode = #tpu.pipeline_mode<synchronous>, transform_indices = @transform_5, window_bounds = array<i64: 128, 128>}, {pipeline_mode = #tpu.pipeline_mode<synchronous>, transform_indices = @transform_6, window_bounds = array<i64: 1, 128>}, {pipeline_mode = #tpu.pipeline_mode<synchronous>, transform_indices = @transform_7, window_bounds = array<i64: 128, 128>}, {pipeline_mode = #tpu.pipeline_mode<synchronous>, transform_indices = @transform_8, window_bounds = array<i64: 1, 128>}, {transform_indices = @transform_9, window_bounds = array<i64: 8, 128>}]} {
    %c0 = arith.constant 0 : index
    %c0_0 = arith.constant 0 : index
    %0 = vector.load %arg1[%c0, %c0_0] : memref<8x16xf32, #tpu.memory_space<vmem>>, vector<8x16xf32>
    %c0_1 = arith.constant 0 : index
    %c0_2 = arith.constant 0 : index
    %1 = vector.load %arg2[%c0_1, %c0_2] : memref<16x384xf32, #tpu.memory_space<vmem>>, vector<16x384xf32>
    %cst = arith.constant dense<0.000000e+00> : vector<8x384xf32>
    %2 = tpu.matmul %0, %1, %cst {dimension_numbers = #tpu.dot_dimension_numbers<[1], [0], [0], [1], [0, 0, 1, 1], [], []>} : vector<8x16xf32>, vector<16x384xf32>, vector<8x384xf32> -> vector<8x384xf32>
    %c0_3 = arith.constant 0 : index
    %c0_4 = arith.constant 0 : index
    %3 = vector.load %arg3[%c0_3, %c0_4] : memref<1x384xf32, #tpu.memory_space<vmem>>, vector<1x384xf32>
    %4 = vector.broadcast %3 : vector<1x384xf32> to vector<8x384xf32>
    %5 = arith.addf %2, %4 : vector<8x384xf32>
    %cst_5 = arith.constant 0.000000e+00 : f32
    %6 = vector.broadcast %cst_5 : f32 to vector<8x384xf32>
    %7 = arith.maximumf %5, %6 : vector<8x384xf32>
    %c0_6 = arith.constant 0 : index
    %c0_7 = arith.constant 0 : index
    %8 = vector.load %arg4[%c0_6, %c0_7] : memref<384x128xf32, #tpu.memory_space<vmem>>, vector<384x128xf32>
    %cst_8 = arith.constant dense<0.000000e+00> : vector<8x128xf32>
    %9 = tpu.matmul %7, %8, %cst_8 {dimension_numbers = #tpu.dot_dimension_numbers<[1], [0], [0], [1], [0, 0, 1, 1], [], []>} : vector<8x384xf32>, vector<384x128xf32>, vector<8x128xf32> -> vector<8x128xf32>
    %c0_9 = arith.constant 0 : index
    %c0_10 = arith.constant 0 : index
    %10 = vector.load %arg5[%c0_9, %c0_10] : memref<1x128xf32, #tpu.memory_space<vmem>>, vector<1x128xf32>
    %11 = vector.broadcast %10 : vector<1x128xf32> to vector<8x128xf32>
    %12 = arith.addf %9, %11 : vector<8x128xf32>
    %cst_11 = arith.constant 0.000000e+00 : f32
    %13 = vector.broadcast %cst_11 : f32 to vector<8x128xf32>
    %14 = arith.maximumf %12, %13 : vector<8x128xf32>
    %c0_12 = arith.constant 0 : index
    %c0_13 = arith.constant 0 : index
    %15 = vector.load %arg6[%c0_12, %c0_13] : memref<128x128xf32, #tpu.memory_space<vmem>>, vector<128x128xf32>
    %cst_14 = arith.constant dense<0.000000e+00> : vector<8x128xf32>
    %16 = tpu.matmul %14, %15, %cst_14 {dimension_numbers = #tpu.dot_dimension_numbers<[1], [0], [0], [1], [0, 0, 1, 1], [], []>} : vector<8x128xf32>, vector<128x128xf32>, vector<8x128xf32> -> vector<8x128xf32>
    %c0_15 = arith.constant 0 : index
    %c0_16 = arith.constant 0 : index
    %17 = vector.load %arg7[%c0_15, %c0_16] : memref<1x128xf32, #tpu.memory_space<vmem>>, vector<1x128xf32>
    %18 = vector.broadcast %17 : vector<1x128xf32> to vector<8x128xf32>
    %19 = arith.addf %16, %18 : vector<8x128xf32>
    %cst_17 = arith.constant 0.000000e+00 : f32
    %20 = vector.broadcast %cst_17 : f32 to vector<8x128xf32>
    %21 = arith.maximumf %19, %20 : vector<8x128xf32>
    %c0_18 = arith.constant 0 : index
    %c0_19 = arith.constant 0 : index
    %22 = vector.load %arg8[%c0_18, %c0_19] : memref<128x128xf32, #tpu.memory_space<vmem>>, vector<128x128xf32>
    %cst_20 = arith.constant dense<0.000000e+00> : vector<8x128xf32>
    %23 = tpu.matmul %21, %22, %cst_20 {dimension_numbers = #tpu.dot_dimension_numbers<[1], [0], [0], [1], [0, 0, 1, 1], [], []>} : vector<8x128xf32>, vector<128x128xf32>, vector<8x128xf32> -> vector<8x128xf32>
    %c0_21 = arith.constant 0 : index
    %c0_22 = arith.constant 0 : index
    %24 = vector.load %arg9[%c0_21, %c0_22] : memref<1x128xf32, #tpu.memory_space<vmem>>, vector<1x128xf32>
    %25 = vector.broadcast %24 : vector<1x128xf32> to vector<8x128xf32>
    %26 = arith.addf %23, %25 : vector<8x128xf32>
    %c0_23 = arith.constant 0 : index
    %c0_24 = arith.constant 0 : index
    %27 = vector.load %arg10[%c0_23, %c0_24] : memref<8x128xf32, #tpu.memory_space<vmem>>, vector<8x128xf32>
    tpu.vector_store %arg10[%c0_23, %c0_24], %26 {strides = array<i32>} : memref<8x128xf32, #tpu.memory_space<vmem>>, vector<8x128xf32>,
    return
  }
  func.func @transform_0(%arg0: i32) -> (i32, i32) {
    %c0_i32 = arith.constant 0 : i32
    %c0_i32_0 = arith.constant 0 : i32
    return %arg0, %c0_i32 : i32, i32
  }
  func.func @transform_1(%arg0: i32) -> (i32, i32) {
    %c0_i32 = arith.constant 0 : i32
    %c0_i32_0 = arith.constant 0 : i32
    %c0_i32_1 = arith.constant 0 : i32
    return %c0_i32, %c0_i32_0 : i32, i32
  }
  func.func @transform_2(%arg0: i32) -> (i32, i32) {
    %c0_i32 = arith.constant 0 : i32
    %c0_i32_0 = arith.constant 0 : i32
    %c0_i32_1 = arith.constant 0 : i32
    return %c0_i32, %c0_i32_0 : i32, i32
  }
  func.func @transform_3(%arg0: i32) -> (i32, i32) {
    %c0_i32 = arith.constant 0 : i32
    %c0_i32_0 = arith.constant 0 : i32
    %c0_i32_1 = arith.constant 0 : i32
    return %c0_i32, %c0_i32_0 : i32, i32
  }
  func.func @transform_4(%arg0: i32) -> (i32, i32) {
    %c0_i32 = arith.constant 0 : i32
    %c0_i32_0 = arith.constant 0 : i32
    %c0_i32_1 = arith.constant 0 : i32
    return %c0_i32, %c0_i32_0 : i32, i32
  }
  func.func @transform_5(%arg0: i32) -> (i32, i32) {
    %c0_i32 = arith.constant 0 : i32
    %c0_i32_0 = arith.constant 0 : i32
    %c0_i32_1 = arith.constant 0 : i32
    return %c0_i32, %c0_i32_0 : i32, i32
  }
  func.func @transform_6(%arg0: i32) -> (i32, i32) {
    %c0_i32 = arith.constant 0 : i32
    %c0_i32_0 = arith.constant 0 : i32
    %c0_i32_1 = arith.constant 0 : i32
    return %c0_i32, %c0_i32_0 : i32, i32
  }
  func.func @transform_7(%arg0: i32) -> (i32, i32) {
    %c0_i32 = arith.constant 0 : i32
    %c0_i32_0 = arith.constant 0 : i32
    %c0_i32_1 = arith.constant 0 : i32
    return %c0_i32, %c0_i32_0 : i32, i32
  }
  func.func @transform_8(%arg0: i32) -> (i32, i32) {
    %c0_i32 = arith.constant 0 : i32
    %c0_i32_0 = arith.constant 0 : i32
    %c0_i32_1 = arith.constant 0 : i32
    return %c0_i32, %c0_i32_0 : i32, i32
  }
  func.func @transform_9(%arg0: i32) -> (i32, i32) {
    %c0_i32 = arith.constant 0 : i32
    %c0_i32_0 = arith.constant 0 : i32
    return %arg0, %c0_i32 : i32, i32
  }
}

</mosaic_0001>

<bundles_post_ra>
// kernel: _lambda_.1
= control target key start
LH: loop header
LB: loop body
LE: loop exit
PB: predicated region body
PF: predicated region fallthrough
CT: control target
= control target key end

     0   :  { %14 = vsyncpa [#allocation3], 0  ;;  %s716_s0 = inlined_call_operand.hbm [shape: f32[8,16], index: 0, kind: input, shape index: {}]   ;;  %s717_s1 = inlined_call_operand.hbm [shape: f32[16,384], index: 1, kind: input, shape index: {}]   ;;  %s718_s2 = inlined_call_operand.hbm [shape: f32[1,384], index: 2, kind: input, shape index: {}]   ;;  %s719_s3 = inlined_call_operand.hbm [shape: f32[384,128], index: 3, kind: input, shape index: {}]   ;;  %s720_s4 = inlined_call_operand.vmem [shape: f32[1,128], index: 4, kind: input, shape index: {}]   ;;  %s721_s5 = inlined_call_operand.hbm [shape: f32[128,128], index: 5, kind: input, shape index: {}]   ;;  %s722_s6 = inlined_call_operand.vmem [shape: f32[1,128], index: 6, kind: input, shape index: {}]   ;;  %s723_s7 = inlined_call_operand.hbm [shape: f32[128,128], index: 7, kind: input, shape index: {}]   ;;  %s724_s8 = inlined_call_operand.hbm [shape: f32[1,128], index: 8, kind: input, shape index: {}]   ;;  %s725_s9 = inlined_call_operand.vmem [shape: f32[8,128], index: 9, kind: output, shape index: {}]  }
   0x1   :  { %15 = vsyncpa [#allocation5], 0 }
   0x2   :  { %16 = vsyncpa [#allocation8], 0  ;;  %s33_s11 = sshll.u32 %s717_s1, 4  ;;  %s34_s11 = int_to_ptr.hbm [resolvable:$true] %s33_s11 }
   0x3   :  { %17 = vsyncpa [#allocation11], 0  ;;  %s613_s12 = smov [#allocation4]   ;;  %s57_s16 = sshll.u32 %s719_s3, 4  ;;  %s58_s16 = int_to_ptr.hbm [resolvable:$true] %s57_s16 }
   0x4   :  { %s35_s13 = sshll.u32 %s613_s12, 4  ;;  %s614_s17 = smov 384   ;;  %s36_s13 = int_to_ptr.vmem [resolvable:$true] %s35_s13 }
   0x5   :  { %s615_s18 = smov 24   ;;  %s616_s19 = smov [#allocation7]  }
   0x6   :  { %41 = dma.hbm_to_vmem [thread:$0]  %s34_s11, 768, %s36_s13, [#allocation5], %s614_s17, %s614_s17, %s615_s18  }
   0x7   :  { %s59_s20 = sshll.u32 %s616_s19, 4  ;;  %s617_s21 = smov 128   ;;  %s60_s20 = int_to_ptr.vmem [resolvable:$true] %s59_s20 }
   0x8   :  { %s618_s22 = smov 8   ;;  %s87_s24 = sshll.u32 %s723_s7, 4  ;;  %s88_s24 = int_to_ptr.hbm [resolvable:$true] %s87_s24 }
   0x9   :  { %65 = dma.hbm_to_vmem [thread:$0]  %s58_s16, 6144, %s60_s20, [#allocation8], %s617_s21, %s617_s21, %s618_s22  }
   0xa   :  { %s619_s25 = smov [#allocation10]   ;;  %s23_s28 = sshll.u32 %s716_s0, 4  ;;  %s24_s28 = int_to_ptr.hbm [resolvable:$true] %s23_s28 }
   0xb   :  { %s89_s3 = sshll.u32 %s619_s25, 4  ;;  %s620_s29 = smov [#allocation2]   ;;  %s90_s3 = int_to_ptr.vmem [resolvable:$true] %s89_s3 }
   0xc   :  { %95 = dma.hbm_to_vmem [thread:$0]  %s88_s24, 2048, %s90_s3, [#allocation11], %s617_s21, %s617_s21, %s618_s22  }
   0xd   :  { %s25_s30 = sshll.u32 %s620_s29, 4  ;;  %s47_s12 = sshll.u32 %s718_s2, 4  ;;  %s26_s30 = int_to_ptr.vmem [resolvable:$true] %s25_s30  ;;  %s48_s12 = int_to_ptr.hbm [resolvable:$true] %s47_s12 }
   0xe   :  { %28 = dma.hbm_to_vmem [thread:$0]  %s24_s28, 128, %s26_s30, [#allocation3]  }
   0xf   :  { %s72_s14 = sshll.u32 %s721_s5, 4  ;;  %s621_s15 = smov [#allocation6]   ;;  %s73_s14 = int_to_ptr.hbm [resolvable:$true] %s72_s14 }
  0x10   :  { %s49_s0 = sshll.u32 %s621_s15, 4  ;;  %s622_s16 = smov [#allocation9]   ;;  %s50_s0 = int_to_ptr.vmem [resolvable:$true] %s49_s0 }
  0x11   :  { %52 = dma.hbm_to_vmem [thread:$0]  %s48_s12, 48, %s50_s0, [#allocation5]  }
  0x12   :  { %s74_s17 = sshll.u32 %s622_s16, 4  ;;  %s101_s20 = sshll.u32 %s724_s8, 4  ;;  %s75_s17 = int_to_ptr.vmem [resolvable:$true] %s74_s17  ;;  %s102_s20 = int_to_ptr.hbm [resolvable:$true] %s101_s20 }
  0x13   :  { %80 = dma.hbm_to_vmem [thread:$0]  %s73_s14, 2048, %s75_s17, [#allocation8], %s617_s21, %s617_s21, %s618_s22  }
  0x14   :  { %s623_s2 = smov [#allocation12]  }
  0x15   :  { %s103_s1 = sshll.u32 %s623_s2, 4  ;;  %s104_s1 = int_to_ptr.vmem [resolvable:$true] %s103_s1 }
  0x16   :  { %106 = dma.hbm_to_vmem [thread:$0]  %s102_s20, 16, %s104_s1, [#allocation11]  }
  0x17   :  { %605 = dma.done.wait [#allocation3], 128  }
  0x18   :  { %606 = vsyncadd [#allocation3], 4294967168 }
  0x19   :  { %607 = dma.done.wait [#allocation5], 816  }
  0x1a   :  { %608 = vsyncadd [#allocation5], 4294966480 }
  0x1b   :  { %609 = dma.done.wait [#allocation8], 8192  }
  0x1c   :  { %610 = vsyncadd [#allocation8], 4294959104 }
  0x1d   :  { %611 = dma.done.wait [#allocation11], 2064  }
  0x1e   :  { %612 = vsyncadd [#allocation11], 4294965232  ;;  %v139_v0 = vld [vmem:[#allocation4 + $0x18] sm:$0xff]  ;;  %v136_v1 = vld [vmem:[#allocation4] sm:$0xff]  ;;  %vm150_vm0 = vcmask 130048  }
  0x1f   :  { %v135_v2 = vld [vmem:[#allocation2] sm:$0xff]  ;;  %168 = vmatpush.msra.mxu0 %v139_v0  ;;  %v141_v3 = vld [vmem:[#allocation4 + $0x28] sm:$0xff]  ;;  %v138_v4 = vld [vmem:[#allocation4 + $0x10] sm:$0xff] }
  0x20   :  { %v140_v5 = vld [vmem:[#allocation4 + $0x20] sm:$0xff]  ;;  %208 = vmatpush.msra.mxu2 %v141_v3  ;;  %v137_v6 = vld [vmem:[#allocation4 + $0x8] sm:$0xff]  ;;  %v229_v14 = vld [vmem:[#allocation7 + $0x60] sm:$0xff] }
  0x21   :  { %188 = vmatpush.msra.mxu1 %v140_v5  ;;  %v232_v7 = vld [vmem:[#allocation7 + $0x78] sm:$0xff]  ;;  %169 = vmatpush.msra.mxu0 %v136_v1  ;;  %v231_v8 = vld [vmem:[#allocation7 + $0x70] sm:$0xff]  ;;  %v230_v10 = vld [vmem:[#allocation7 + $0x68] sm:$0xff] }
  0x22   :  { %269 = vmatpush.msra.mxu3 %v232_v7  ;;  %420 = vmatmul.msk.f32.vlgmr.msra.gmra.mxu0 %vm150_vm0, %v135_v2  ;;  %v248_v9 = vld [vmem:[#allocation7 + $0xf8] sm:$0xff]  ;;  %v247_v12 = vld [vmem:[#allocation7 + $0xf0] sm:$0xff]  ;;  %v246_v15 = vld [vmem:[#allocation7 + $0xe8] sm:$0xff] }
  0x23   :  { %209 = vmatpush.msra.mxu2 %v138_v4  ;;  %189 = vmatpush.msra.mxu1 %v137_v6  ;;  %v264_v11 = vld [vmem:[#allocation7 + $0x178] sm:$0xff]  ;;  %v263_v13 = vld [vmem:[#allocation7 + $0x170] sm:$0xff]  ;;  %v262_v16 = vld [vmem:[#allocation7 + $0x168] sm:$0xff] }
  0x24   :  { %422 = vmatmul.msk.f32.vlgmr.msra.gmra.mxu2 %vm150_vm0, %v135_v2  ;;  %421 = vmatmul.msk.f32.vlgmr.msra.gmra.mxu1 %vm150_vm0, %v135_v2  ;;  %v228_v17 = vld [vmem:[#allocation7 + $0x58] sm:$0xff]  ;;  %v245_v18 = vld [vmem:[#allocation7 + $0xe0] sm:$0xff]  ;;  %v227_v20 = vld [vmem:[#allocation7 + $0x50] sm:$0xff] }
  0x25   :  { %270 = vmatpush.msra.mxu3 %v231_v8  ;;  %289 = vmatpush.msrb.mxu0 %v248_v9  ;;  %v261_v19 = vld [vmem:[#allocation7 + $0x160] sm:$0xff]  ;;  %v244_v21 = vld [vmem:[#allocation7 + $0xd8] sm:$0xff]  ;;  %v226_v23 = vld [vmem:[#allocation7 + $0x48] sm:$0xff] }
  0x26   :  { %309 = vmatpush.msrb.mxu1 %v264_v11  ;;  %v260_v22 = vld [vmem:[#allocation7 + $0x158] sm:$0xff]  ;;  %v243_v24 = vld [vmem:[#allocation7 + $0xd0] sm:$0xff]  ;;  %v225_v26 = vld [vmem:[#allocation7 + $0x40] sm:$0xff] }
  0x27   :  { %271 = vmatpush.msra.mxu3 %v230_v10  ;;  %290 = vmatpush.msrb.mxu0 %v247_v12  ;;  %v259_v25 = vld [vmem:[#allocation7 + $0x150] sm:$0xff]  ;;  %v242_v27 = vld [vmem:[#allocation7 + $0xc8] sm:$0xff]  ;;  %v224_v29 = vld [vmem:[#allocation7 + $0x38] sm:$0xff] }
  0x28   :  { %310 = vmatpush.msrb.mxu1 %v263_v13  ;;  %v258_v28 = vld [vmem:[#allocation7 + $0x148] sm:$0xff]  ;;  %v241_v30 = vld [vmem:[#allocation7 + $0xc0] sm:$0xff]  ;;  %v223_v32 = vld [vmem:[#allocation7 + $0x30] sm:$0xff] }
  0x29   :  { %272 = vmatpush.msra.mxu3 %v229_v14  ;;  %291 = vmatpush.msrb.mxu0 %v246_v15  ;;  %v257_v31 = vld [vmem:[#allocation7 + $0x140] sm:$0xff]  ;;  %v240_v33 = vld [vmem:[#allocation7 + $0xb8] sm:$0xff]  ;;  %v222_v34 = vld [vmem:[#allocation7 + $0x28] sm:$0xff] }
  0x2a   :  { %311 = vmatpush.msrb.mxu1 %v262_v16  ;;  %v221_v35 = vld [vmem:[#allocation7 + $0x20] sm:$0xff]  ;;  %v220_v36 = vld [vmem:[#allocation7 + $0x18] sm:$0xff]  ;;  %v219_v37 = vld [vmem:[#allocation7 + $0x10] sm:$0xff] }
  0x2b   :  { %273 = vmatpush.msra.mxu3 %v228_v17  ;;  %292 = vmatpush.msrb.mxu0 %v245_v18  ;;  %v239_v38 = vld [vmem:[#allocation7 + $0xb0] sm:$0xff]  ;;  %v256_v39 = vld [vmem:[#allocation7 + $0x138] sm:$0xff]  ;;  %v218_v40 = vld [vmem:[#allocation7 + $0x8] sm:$0xff] }
  0x2c   :  { %312 = vmatpush.msrb.mxu1 %v261_v19  ;;  %v238_v41 = vld [vmem:[#allocation7 + $0xa8] sm:$0xff]  ;;  %v255_v42 = vld [vmem:[#allocation7 + $0x130] sm:$0xff]  ;;  %v217_v43 = vld [vmem:[#allocation7] sm:$0xff] }
  0x2d   :  { %274 = vmatpush.msra.mxu3 %v227_v20  ;;  %293 = vmatpush.msrb.mxu0 %v244_v21  ;;  %v237_v44 = vld [vmem:[#allocation7 + $0xa0] sm:$0xff]  ;;  %v254_v45 = vld [vmem:[#allocation7 + $0x128] sm:$0xff]  ;;  %v236_v46 = vld [vmem:[#allocation7 + $0x98] sm:$0xff] }
  0x2e   :  { %313 = vmatpush.msrb.mxu1 %v260_v22  ;;  %v253_v47 = vld [vmem:[#allocation7 + $0x120] sm:$0xff]  ;;  %v235_v48 = vld [vmem:[#allocation7 + $0x90] sm:$0xff]  ;;  %v252_v49 = vld [vmem:[#allocation7 + $0x118] sm:$0xff] }
  0x2f   :  { %275 = vmatpush.msra.mxu3 %v226_v23  ;;  %294 = vmatpush.msrb.mxu0 %v243_v24  ;;  %v234_v50 = vld [vmem:[#allocation7 + $0x88] sm:$0xff]  ;;  %v251_v51 = vld [vmem:[#allocation7 + $0x110] sm:$0xff]  ;;  %v233_v52 = vld [vmem:[#allocation7 + $0x80] sm:$0xff] }
  0x30   :  { %314 = vmatpush.msrb.mxu1 %v259_v25  ;;  %v250_v53 = vld [vmem:[#allocation7 + $0x108] sm:$0xff]  ;;  %v249_v54 = vld [vmem:[#allocation7 + $0x100] sm:$0xff]  ;;  %v345_v55 = vld [vmem:[#allocation9 + $0x78] sm:$0xff] }
  0x31   :  { %276 = vmatpush.msra.mxu3 %v225_v26  ;;  %295 = vmatpush.msrb.mxu0 %v242_v27  ;;  %v344_v56 = vld [vmem:[#allocation9 + $0x70] sm:$0xff]  ;;  %v343_v57 = vld [vmem:[#allocation9 + $0x68] sm:$0xff]  ;;  %v342_v58 = vld [vmem:[#allocation9 + $0x60] sm:$0xff] }
  0x32   :  { %315 = vmatpush.msrb.mxu1 %v258_v28  ;;  %350 = vmatpush.msrb.mxu2 %v345_v55  ;;  %v341_v59 = vld [vmem:[#allocation9 + $0x58] sm:$0xff]  ;;  %v340_v60 = vld [vmem:[#allocation9 + $0x50] sm:$0xff]  ;;  %v339_v61 = vld [vmem:[#allocation9 + $0x48] sm:$0xff] }
  0x33   :  { %277 = vmatpush.msra.mxu3 %v224_v29  ;;  %296 = vmatpush.msrb.mxu0 %v241_v30  ;;  %v338_v62 = vld [vmem:[#allocation9 + $0x40] sm:$0xff]  ;;  %v142_v63 = vld [vmem:[#allocation6] sm:$0x7]  ;;  %v336_v1 = vld [vmem:[#allocation9 + $0x30] sm:$0xff] }
  0x34   :  { %316 = vmatpush.msrb.mxu1 %v257_v31  ;;  %351 = vmatpush.msrb.mxu2 %v344_v56  ;;  %v337_v0 = vld [vmem:[#allocation9 + $0x38] sm:$0xff]  ;;  %v144_v2 = vperm.slane %v142_v63, 0  ;;  %v335_v3 = vld [vmem:[#allocation9 + $0x28] sm:$0xff]  ;;  %v145_v4 = vperm.slane %v142_v63, 1  ;;  %v146_v10 = vperm.slane %v142_v63, 2  ;;  %v334_v15 = vld [vmem:[#allocation9 + $0x20] sm:$0xff] }
  0x35   :  { %278 = vmatpush.msra.mxu3 %v223_v32  ;;  %297 = vmatpush.msrb.mxu0 %v240_v33  ;;  %v333_v16 = vld [vmem:[#allocation9 + $0x18] sm:$0xff]  ;;  %v332_v17 = vld [vmem:[#allocation9 + $0x10] sm:$0xff]  ;;  %v331_v18 = vld [vmem:[#allocation9 + $0x8] sm:$0xff] }
  0x36   :  { %317 = vmatpush.msrb.mxu1 %v256_v39  ;;  %352 = vmatpush.msrb.mxu2 %v343_v57  ;;  %v330_v19 = vld [vmem:[#allocation9] sm:$0xff]  ;;  %v386_v20 = vld [vmem:[#allocation10 + $0x78] sm:$0xff]  ;;  %v385_v21 = vld [vmem:[#allocation10 + $0x70] sm:$0xff] }
  0x37   :  { %279 = vmatpush.msra.mxu3 %v222_v34  ;;  %298 = vmatpush.msrb.mxu0 %v239_v38  ;;  %v384_v22 = vld [vmem:[#allocation10 + $0x68] sm:$0xff]  ;;  %v383_v23 = vld [vmem:[#allocation10 + $0x60] sm:$0xff]  ;;  %v382_v24 = vld [vmem:[#allocation10 + $0x58] sm:$0xff] }
  0x38   :  { %318 = vmatpush.msrb.mxu1 %v255_v42  ;;  %353 = vmatpush.msrb.mxu2 %v342_v58  ;;  %v381_v25 = vld [vmem:[#allocation10 + $0x50] sm:$0xff]  ;;  %v380_v26 = vld [vmem:[#allocation10 + $0x48] sm:$0xff]  ;;  %v379_v27 = vld [vmem:[#allocation10 + $0x40] sm:$0xff] }
  0x39   :  { %280 = vmatpush.msra.mxu3 %v221_v35  ;;  %299 = vmatpush.msrb.mxu0 %v238_v41  ;;  %v378_v28 = vld [vmem:[#allocation10 + $0x38] sm:$0xff]  ;;  %v377_v29 = vld [vmem:[#allocation10 + $0x30] sm:$0xff]  ;;  %v376_v30 = vld [vmem:[#allocation10 + $0x28] sm:$0xff] }
  0x3a   :  { %319 = vmatpush.msrb.mxu1 %v254_v45  ;;  %354 = vmatpush.msrb.mxu2 %v341_v59  ;;  %v434_v31 = vld [vmem:[%s720_s4] ss:$0 sm:$0xff]  ;;  %v374_v33 = vld [vmem:[#allocation10 + $0x18] sm:$0xff]  ;;  %v373_v41 = vld [vmem:[#allocation10 + $0x10] sm:$0xff] }
  0x3b   :  { %281 = vmatpush.msra.mxu3 %v220_v36  ;;  %300 = vmatpush.msrb.mxu0 %v237_v44  ;;  %v375_v32 = vld [vmem:[#allocation10 + $0x20] sm:$0xff]  ;;  %v372_v42 = vld [vmem:[#allocation10 + $0x8] sm:$0xff] }
  0x3c   :  { %320 = vmatpush.msrb.mxu1 %v253_v47  ;;  %355 = vmatpush.msrb.mxu2 %v340_v60  ;;  %v435_v44 = vld [vmem:[%s722_s6] ss:$0 sm:$0xff] }
  0x3d   :  { %282 = vmatpush.msra.mxu3 %v219_v37  ;;  %301 = vmatpush.msrb.mxu0 %v236_v46 }
  0x3e   :  { %321 = vmatpush.msrb.mxu1 %v252_v49  ;;  %356 = vmatpush.msrb.mxu2 %v339_v61 }
  0x3f   :  { %283 = vmatpush.msra.mxu3 %v218_v40  ;;  %302 = vmatpush.msrb.mxu0 %v235_v48  ;;  %v436_v48 = vld [vmem:[#allocation12] ss:$0 sm:$0xff] }
  0x40   :  { %322 = vmatpush.msrb.mxu1 %v251_v51  ;;  %357 = vmatpush.msrb.mxu2 %v338_v62 }
  0x41   :  { %284 = vmatpush.msra.mxu3 %v217_v43  ;;  %303 = vmatpush.msrb.mxu0 %v234_v50  ;;  %v371_v43 = vld [vmem:[#allocation10] sm:$0xff] }
  0x42   :  { %323 = vmatpush.msrb.mxu1 %v250_v53  ;;  %358 = vmatpush.msrb.mxu2 %v337_v0 }
  0x43   :  { %304 = vmatpush.msrb.mxu0 %v233_v52  ;;  %391 = vmatpush.msrb.mxu3 %v386_v20 }
  0x44   :  { %324 = vmatpush.msrb.mxu1 %v249_v54  ;;  %359 = vmatpush.msrb.mxu2 %v336_v1 }
  0x45   :  { %392 = vmatpush.msrb.mxu3 %v385_v21 }
  0x46   :  { %360 = vmatpush.msrb.mxu2 %v335_v3 }
  0x47   :  { %393 = vmatpush.msrb.mxu3 %v384_v22 }
  0x48   :  { %361 = vmatpush.msrb.mxu2 %v334_v15 }
  0x49   :  { %394 = vmatpush.msrb.mxu3 %v383_v23 }
  0x4a   :  { %362 = vmatpush.msrb.mxu2 %v333_v16 }
  0x4b   :  { %395 = vmatpush.msrb.mxu3 %v382_v24 }
  0x4c   :  { %363 = vmatpush.msrb.mxu2 %v332_v17 }
  0x4d   :  { %396 = vmatpush.msrb.mxu3 %v381_v25 }
  0x4e   :  { %364 = vmatpush.msrb.mxu2 %v331_v18 }
  0x4f   :  { %397 = vmatpush.msrb.mxu3 %v380_v26 }
  0x50   :  { %365 = vmatpush.msrb.mxu2 %v330_v19 }
  0x51   :  { %398 = vmatpush.msrb.mxu3 %v379_v27 }
  0x53   :  { %399 = vmatpush.msrb.mxu3 %v378_v28 }
  0x55   :  { %400 = vmatpush.msrb.mxu3 %v377_v29 }
  0x57   :  { %401 = vmatpush.msrb.mxu3 %v376_v30 }
  0x59   :  { %402 = vmatpush.msrb.mxu3 %v375_v32 }
  0x5b   :  { %403 = vmatpush.msrb.mxu3 %v374_v33 }
  0x5d   :  { %404 = vmatpush.msrb.mxu3 %v373_v41 }
  0x5f   :  { %405 = vmatpush.msrb.mxu3 %v372_v42 }
  0x61   :  { %406 = vmatpush.msrb.mxu3 %v371_v43 }
  0x9f   :  { %v171_v5 = vpop.f32.mrf.mxu0 }
  0xa0   :  { %v172_v6 = vadd.f32 %v171_v5, %v144_v2 }
  0xa1   :  { %v191_v7 = vpop.f32.mrf.mxu1 }
  0xa2   :  { %v214_v8 = vmax.f32 %v172_v6, 0.0  ;;  %v192_v9 = vadd.f32 %v191_v7, %v145_v4 }
  0xa4   :  { %285 = vmatmul.f32.vlgmr.msra.gmra.mxu3 %v214_v8  ;;  %v215_v11 = vmax.f32 %v192_v9, 0.0 }
  0xa6   :  { %305 = vmatmul.f32.vlgmr.msrb.gmra.mxu0 %v215_v11 }
  0xa7   :  { %v211_v12 = vpop.f32.mrf.mxu2 }
  0xa8   :  { %v212_v13 = vadd.f32 %v211_v12, %v146_v10 }
  0xaa   :  { %v216_v14 = vmax.f32 %v212_v13, 0.0 }
  0xac   :  { %325 = vmatmul.f32.vlgmr.msrb.gmra.mxu1 %v216_v14 }
 0x123   :  { %v306_v35 = vpop.f32.mrf.mxu0 }
 0x127   :  { %v286_v34 = vpop.f32.mrf.mxu3 }
 0x128   :  { %v287_v36 = vadd.f32 %v434_v31, %v286_v34 }
 0x129   :  { %v326_v37 = vpop.f32.mrf.mxu1 }
 0x12a   :  { %v307_v38 = vadd.f32 %v306_v35, %v287_v36 }
 0x12c   :  { %v327_v39 = vadd.f32 %v326_v37, %v307_v38 }
 0x12e   :  { %v329_v40 = vmax.f32 %v327_v39, 0.0 }
 0x130   :  { %366 = vmatmul.f32.vlgmr.msrb.gmra.mxu2 %v329_v40 }
 0x1b3   :  { %v367_v45 = vpop.f32.mrf.mxu2 }
 0x1b4   :  { %v368_v46 = vadd.f32 %v435_v44, %v367_v45 }
 0x1b6   :  { %v370_v47 = vmax.f32 %v368_v46, 0.0 }
 0x1b8   :  { %407 = vmatmul.f32.vlgmr.msrb.gmra.mxu3 %v370_v47 }
 0x23b   :  { %v408_v49 = vpop.f32.mrf.mxu3 }
 0x23c   :  { %v409_v50 = vadd.f32 %v436_v48, %v408_v49 }
 0x23e   :  { %411 = vst [vmem:[%s725_s9] sm:$0xff] %v409_v50 }
 0x23f   :  { %416 = vsyncpa [#allocation3], 1 }
 0x240   :  { %417 = vsyncpa [#allocation5], 1 }
 0x241   :  { %418 = vsyncpa [#allocation8], 1 }
 0x242   :  { %419 = vsyncpa [#allocation11], 1 }

</bundles_post_ra>
